<compile_context>
chip_gen: v5e
topology: v5e:2x2
jax: 0.10.0
libtpu: 0.0.40
codegen_flags: <defaults>
</compile_context>

<pallas_src>
import jax
import jax.numpy as jnp
from jax.experimental import pallas as pl
from jax.experimental.pallas import tpu as pltpu


def _preprocess_kernel(x_ref, o_ref):
    # elementwise hot path: uint8 -> float32, scale by 1/255
    # (multiply instead of divide; <=1 ulp difference vs torch's x / 255.0)
    o_ref[...] = x_ref[...].astype(jnp.float32) * jnp.float32(1.0 / 255.0)


def preprocess_atari(x: jax.Array) -> jax.Array:
    """JAX/Pallas equivalent of PreprocessAtari.forward."""
    assert x.ndim in (3, 4), f"Bad observation shape: {x.shape}"
    assert x.shape[-3:] == (4, 84, 84), f"Bad observation shape: {x.shape}"
    assert x.dtype == jnp.uint8, f"Bad observation dtype: {x.dtype}"

    if x.ndim == 3:
        # Single ~28 KB frame-stack: a fused XLA elementwise op beats the
        # Pallas launch + pipeline prologue overhead (per perf review).
        return x.astype(jnp.float32) * jnp.float32(1.0 / 255.0)

    B, C, H, W = x.shape
    F = C * H * W  # 28224, contiguous row per frame-stack (lane-dense layout)

    # 32 frames per grid step (multiple of 32 rows keeps the u8 input packed
    # on full vregs); small batches use the full batch as one block.
    TILE_B = 32 if B >= 32 else B
    B_pad = ((B + TILE_B - 1) // TILE_B) * TILE_B

    x2 = x.reshape(B, F)
    if B_pad != B:
        # Pad the ragged last block so every grid step is a full tile.
        x2 = jnp.pad(x2, ((0, B_pad - B), (0, 0)))

    out2 = pl.pallas_call(
        _preprocess_kernel,
        out_shape=jax.ShapeDtypeStruct((B_pad, F), jnp.float32),
        grid_spec=pltpu.PrefetchScalarGridSpec(
            num_scalar_prefetch=0,
            grid=(B_pad // TILE_B,),
            in_specs=[pl.BlockSpec((TILE_B, F), lambda i: (i, 0))],
            out_specs=pl.BlockSpec((TILE_B, F), lambda i: (i, 0)),
        ),
        compiler_params=pltpu.CompilerParams(
            dimension_semantics=("parallel",),
        ),
    )(x2)

    if B_pad != B:
        out2 = out2[:B]
    return out2.reshape(B, C, H, W)


if __name__ == "__main__":
    key = jax.random.PRNGKey(0)

    # Module forward requires observations of shape (..., 4, 84, 84) uint8.
    x = jax.random.randint(key, (2, 4, 84, 84), 0, 256, dtype=jnp.int32).astype(
        jnp.uint8
    )

    y = jax.block_until_ready(preprocess_atari(x))
    y_ref = x.astype(jnp.float32) / 255.0
    assert y.shape == (2, 4, 84, 84)
    assert y.dtype == jnp.float32
    assert jnp.allclose(y, y_ref)

    # Larger ragged batch (> tile, not a multiple of 32) exercises the
    # multi-step grid and the padded last block.
    xb = jax.random.randint(
        jax.random.PRNGKey(1), (40, 4, 84, 84), 0, 256, dtype=jnp.int32
    ).astype(jnp.uint8)
    yb = jax.block_until_ready(preprocess_atari(xb))
    assert yb.shape == (40, 4, 84, 84)
    assert jnp.allclose(yb, xb.astype(jnp.float32) / 255.0)

    # Unbatched 3-D path (plain-JAX fast path per perf review).
    y3 = jax.block_until_ready(preprocess_atari(x[0]))
    assert y3.shape == (4, 84, 84)
    assert jnp.allclose(y3, y_ref[0])

    print("KERNEL_OK")
</pallas_src>

<mosaic_0001>
module attributes {stable_mosaic.version = 11 : i64} {
  func.func @_preprocess_kernel(%arg0: i32, %arg1: memref<2x28224xi8, #tpu.memory_space<vmem>>, %arg2: memref<2x28224xf32, #tpu.memory_space<vmem>>) attributes {dimension_semantics = [#tpu.dimension_semantics<parallel>], iteration_bounds = array<i64: 1>, scalar_prefetch = 0 : i64, scratch_operands = 0 : i64, tpu.core_type = #tpu.core_type<tc>, window_params = [{transform_indices = @transform_0, window_bounds = array<i64: 2, 28224>}, {transform_indices = @transform_1, window_bounds = array<i64: 2, 28224>}]} {
    %c0 = arith.constant 0 : index
    %c0_0 = arith.constant 0 : index
    %0 = vector.load %arg1[%c0, %c0_0] : memref<2x28224xi8, #tpu.memory_space<vmem>>, vector<2x28224xi8>
    %1 = arith.uitofp %0 : vector<2x28224xi8> to vector<2x28224xf32>
    %cst = arith.constant 0.00392156886 : f32
    %2 = vector.broadcast %cst : f32 to vector<2x28224xf32>
    %3 = arith.mulf %1, %2 : vector<2x28224xf32>
    %c0_1 = arith.constant 0 : index
    %c0_2 = arith.constant 0 : index
    %4 = vector.load %arg2[%c0_1, %c0_2] : memref<2x28224xf32, #tpu.memory_space<vmem>>, vector<2x28224xf32>
    tpu.vector_store %arg2[%c0_1, %c0_2], %3 {strides = array<i32>} : memref<2x28224xf32, #tpu.memory_space<vmem>>, vector<2x28224xf32>,
    return
  }
  func.func @transform_0(%arg0: i32) -> (i32, i32) {
    %c0_i32 = arith.constant 0 : i32
    %c0_i32_0 = arith.constant 0 : i32
    return %arg0, %c0_i32 : i32, i32
  }
  func.func @transform_1(%arg0: i32) -> (i32, i32) {
    %c0_i32 = arith.constant 0 : i32
    %c0_i32_0 = arith.constant 0 : i32
    return %arg0, %c0_i32 : i32, i32
  }
}

</mosaic_0001>

<bundles_post_ra>
// kernel: tpu_custom_call.1
= control target key start
LH: loop header
LB: loop body
LE: loop exit
PB: predicated region body
PF: predicated region fallthrough
CT: control target
= control target key end

     0   :  { %6 = vsyncpa [#allocation3], 0  ;;  %s1309_s0 = inlined_call_operand.hbm [shape: u8[2,28224], index: 0, kind: input, shape index: {}]   ;;  %s1310_s1 = inlined_call_operand.hbm [shape: f32[2,28224], index: 1, kind: output, shape index: {}]  }
   0x1   :  { %7 = vsyncpa [#allocation4], 0  ;;  %s13_s8 = sshll.u32 %s1309_s0, 4  ;;  %s1125_s9 = smov [#allocation2]   ;;  %s14_s8 = int_to_ptr.hbm [resolvable:$true] %s13_s8 }
   0x2   :  { %s15_s10 = sshll.u32 %s1125_s9, 4  ;;  %s16_s10 = int_to_ptr.vmem [resolvable:$true] %s15_s10 }
   0x3   :  { %18 = dma.hbm_to_vmem [thread:$0]  %s14_s8, 3536, %s16_s10, [#allocation3]  }
   0x4   :  { %1121 = dma.done.wait [#allocation3], 3536  }
   0x5   :  { %1122 = vsyncadd [#allocation3], 4294963760  ;;  %v23_v0 = vld [vmem:[#allocation2] sm:$0xff]  ;;  %vm772_vm0 = vcmask 1041408   ;;  %vm774_vm1 = vcmask 1045508   ;;  %v24_v1 = vld [vmem:[#allocation2 + $0x8] sm:$0xff] }
   0x6   :  { %v51_v2 = vunpack.c.0.s8 %v23_v0  ;;  %v52_v3 = vunpack.c.1.s8 %v23_v0  ;;  %vm776_vm2 = vcmask 1043456   ;;  %v53_v4 = vunpack.c.2.s8 %v23_v0  ;;  %v25_v18 = vld [vmem:[#allocation2 + $0x10] sm:$0xff]  ;;  %v26_v55 = vld [vmem:[#allocation2 + $0x18] sm:$0xff]  ;;  %s1126_s0 = smov [#allocation5]   ;;  %s1061_s14 = sshll.u32 %s1310_s1, 4  ;;  %s1062_s14 = int_to_ptr.hbm [resolvable:$true] %s1061_s14 }
   0x7   :  { %v54_v5 = vunpack.c.3.s8 %v23_v0  ;;  %v55_v6 = vunpack.c.0.s8 %v24_v1  ;;  %v56_v7 = vunpack.c.1.s8 %v24_v1  ;;  %v57_v8 = vunpack.c.2.s8 %v24_v1  ;;  %s1059_s11 = sshll.u32 %s1126_s0, 4  ;;  %s1060_s11 = int_to_ptr.vmem [resolvable:$true] %s1059_s11 }
   0x8   :  { %v58_v9 = vunpack.c.3.s8 %v24_v1  ;;  %v162_v10 = vand.u32 255, %v51_v2  ;;  %v163_v11 = vand.u32 255, %v52_v3  ;;  %v164_v12 = vand.u32 255, %v53_v4 }
   0x9   :  { %v165_v13 = vand.u32 255, %v54_v5  ;;  %v166_v14 = vand.u32 255, %v55_v6  ;;  %v167_v15 = vand.u32 255, %v56_v7  ;;  %v168_v16 = vand.u32 255, %v57_v8 }
   0xa   :  { %v169_v17 = vand.u32 255, %v58_v9  ;;  %v273_v19 = vcvt.s32.f32 %v162_v10  ;;  %v274_v20 = vcvt.s32.f32 %v163_v11  ;;  %v275_v21 = vcvt.s32.f32 %v164_v12 }
   0xb   :  { %v276_v22 = vcvt.s32.f32 %v165_v13  ;;  %v277_v23 = vcvt.s32.f32 %v166_v14  ;;  %v278_v24 = vcvt.s32.f32 %v167_v15  ;;  %v279_v25 = vcvt.s32.f32 %v168_v16 }
   0xc   :  { %v280_v26 = vcvt.s32.f32 %v169_v17  ;;  %v384_v27 = vmul.f32 0.003921569, %v273_v19  ;;  %v385_v28 = vmul.f32 0.003921569, %v274_v20  ;;  %v386_v29 = vmul.f32 0.003921569, %v275_v21 }
   0xd   :  { %v59_v30 = vunpack.c.0.s8 %v25_v18  ;;  %v387_v31 = vmul.f32 0.003921569, %v276_v22  ;;  %v388_v32 = vmul.f32 0.003921569, %v277_v23  ;;  %v389_v33 = vmul.f32 0.003921569, %v278_v24 }
   0xe   :  { %v60_v34 = vunpack.c.1.s8 %v25_v18  ;;  %v606_v35 = vrot.slane %v384_v27, 2  ;;  %v607_v36 = vrot.slane %v385_v28, 4  ;;  %v608_v37 = vrot.slane %v385_v28, 6  ;;  %v27_v28 = vld [vmem:[#allocation2 + $0x20] sm:$0xff] }
   0xf   :  { %v609_v38 = vrot.slane %v386_v29, 2  ;;  %v610_v39 = vrot.slane %v387_v31, 4  ;;  %v611_v40 = vrot.slane %v387_v31, 6  ;;  %v612_v41 = vrot.slane %v388_v32, 2 }
  0x10   :  { %v613_v42 = vrot.slane %v389_v33, 4  ;;  %v773_v43 = vsel %vm772_vm0, %v384_v27, %v606_v35  ;;  %v775_v44 = vsel %vm774_vm1, %v607_v36, %v608_v37  ;;  %v614_v46 = vrot.slane %v389_v33, 6 }
  0x11   :  { %v778_v45 = vsel %vm772_vm0, %v386_v29, %v609_v38  ;;  %v777_v47 = vsel %vm776_vm2, %v773_v43, %v775_v44  ;;  %v779_v48 = vsel %vm774_vm1, %v610_v39, %v611_v40  ;;  %v781_v49 = vsel %vm772_vm0, %v388_v32, %v612_v41 }
  0x12   :  { %v390_v50 = vmul.f32 0.003921569, %v279_v25  ;;  %997 = vst [vmem:[#allocation5] sm:$0xff] %v777_v47  ;;  %v780_v51 = vsel %vm776_vm2, %v778_v45, %v779_v48  ;;  %v782_v52 = vsel %vm774_vm1, %v613_v42, %v614_v46  ;;  %v391_v53 = vmul.f32 0.003921569, %v280_v26  ;;  %v28_v45 = vld [vmem:[#allocation2 + $0x28] sm:$0xff] }
  0x13   :  { %v170_v54 = vand.u32 255, %v59_v30  ;;  %998 = vst [vmem:[#allocation5 + $0x8] sm:$0xff] %v780_v51  ;;  %v783_v56 = vsel %vm776_vm2, %v781_v49, %v782_v52  ;;  %v171_v58 = vand.u32 255, %v60_v34  ;;  %v61_v59 = vunpack.c.2.s8 %v25_v18 }
  0x14   :  { %v615_v57 = vrot.slane %v390_v50, 2  ;;  %999 = vst [vmem:[#allocation5 + $0x10] sm:$0xff] %v783_v56  ;;  %v616_v60 = vrot.slane %v391_v53, 4  ;;  %v617_v61 = vrot.slane %v391_v53, 6  ;;  %v62_v63 = vunpack.c.3.s8 %v25_v18 }
  0x15   :  { %v281_v62 = vcvt.s32.f32 %v170_v54  ;;  %v282_v1 = vcvt.s32.f32 %v171_v58  ;;  %v172_v2 = vand.u32 255, %v61_v59  ;;  %v63_v3 = vunpack.c.0.s8 %v26_v55 }
  0x16   :  { %v784_v0 = vsel %vm772_vm0, %v390_v50, %v615_v57  ;;  %v785_v4 = vsel %vm774_vm1, %v616_v60, %v617_v61  ;;  %v173_v6 = vand.u32 255, %v62_v63  ;;  %v64_v7 = vunpack.c.1.s8 %v26_v55 }
  0x17   :  { %v392_v5 = vmul.f32 0.003921569, %v281_v62  ;;  %v786_v8 = vsel %vm776_vm2, %v784_v0, %v785_v4  ;;  %v393_v9 = vmul.f32 0.003921569, %v282_v1  ;;  %v283_v10 = vcvt.s32.f32 %v172_v2 }
  0x18   :  { %v174_v11 = vand.u32 255, %v63_v3  ;;  %1000 = vst [vmem:[#allocation5 + $0x18] sm:$0xff] %v786_v8  ;;  %v284_v13 = vcvt.s32.f32 %v173_v6  ;;  %v175_v14 = vand.u32 255, %v64_v7  ;;  %v65_v15 = vunpack.c.2.s8 %v26_v55 }
  0x19   :  { %v618_v12 = vrot.slane %v392_v5, 2  ;;  %v619_v16 = vrot.slane %v393_v9, 4  ;;  %v620_v17 = vrot.slane %v393_v9, 6  ;;  %v394_v18 = vmul.f32 0.003921569, %v283_v10 }
  0x1a   :  { %v285_v19 = vcvt.s32.f32 %v174_v11  ;;  %v395_v21 = vmul.f32 0.003921569, %v284_v13  ;;  %v286_v22 = vcvt.s32.f32 %v175_v14  ;;  %v66_v23 = vunpack.c.3.s8 %v26_v55 }
  0x1b   :  { %v787_v20 = vsel %vm772_vm0, %v392_v5, %v618_v12  ;;  %v788_v24 = vsel %vm774_vm1, %v619_v16, %v620_v17  ;;  %v621_v25 = vrot.slane %v394_v18, 2  ;;  %v176_v27 = vand.u32 255, %v65_v15 }
  0x1c   :  { %v396_v26 = vmul.f32 0.003921569, %v285_v19  ;;  %v789_v29 = vsel %vm776_vm2, %v787_v20, %v788_v24  ;;  %v622_v30 = vrot.slane %v395_v21, 4  ;;  %v623_v31 = vrot.slane %v395_v21, 6 }
  0x1d   :  { %v397_v32 = vmul.f32 0.003921569, %v286_v22  ;;  %1001 = vst [vmem:[#allocation5 + $0x20] sm:$0xff] %v789_v29  ;;  %v790_v33 = vsel %vm772_vm0, %v394_v18, %v621_v25  ;;  %v177_v35 = vand.u32 255, %v66_v23  ;;  %v287_v36 = vcvt.s32.f32 %v176_v27  ;;  %v29_v22 = vld [vmem:[#allocation2 + $0x30] sm:$0xff] }
  0x1e   :  { %v624_v34 = vrot.slane %v396_v26, 2  ;;  %v791_v37 = vsel %vm774_vm1, %v622_v30, %v623_v31  ;;  %v67_v40 = vunpack.c.0.s8 %v27_v28  ;;  %v68_v47 = vunpack.c.1.s8 %v27_v28 }
  0x1f   :  { %v625_v38 = vrot.slane %v397_v32, 4  ;;  %v626_v39 = vrot.slane %v397_v32, 6  ;;  %v792_v41 = vsel %vm776_vm2, %v790_v33, %v791_v37  ;;  %v288_v43 = vcvt.s32.f32 %v177_v35  ;;  %v30_v35 = vld [vmem:[#allocation2 + $0x38] sm:$0xff] }
  0x20   :  { %v793_v42 = vsel %vm772_vm0, %v396_v26, %v624_v34  ;;  %v398_v44 = vmul.f32 0.003921569, %v287_v36  ;;  %1002 = vst [vmem:[#allocation5 + $0x28] sm:$0xff] %v792_v41  ;;  %v178_v48 = vand.u32 255, %v67_v40  ;;  %v69_v49 = vunpack.c.2.s8 %v27_v28 }
  0x21   :  { %v794_v46 = vsel %vm774_vm1, %v625_v38, %v626_v39  ;;  %v399_v51 = vmul.f32 0.003921569, %v288_v43  ;;  %v70_v53 = vunpack.c.3.s8 %v27_v28  ;;  %v179_v54 = vand.u32 255, %v68_v47 }
  0x22   :  { %v795_v50 = vsel %vm776_vm2, %v793_v42, %v794_v46  ;;  %v627_v52 = vrot.slane %v398_v44, 2  ;;  %v289_v55 = vcvt.s32.f32 %v178_v48  ;;  %v180_v56 = vand.u32 255, %v69_v49 }
  0x23   :  { %1003 = vst [vmem:[#allocation5 + $0x30] sm:$0xff] %v795_v50  ;;  %v71_v57 = vunpack.c.0.s8 %v28_v45  ;;  %v628_v58 = vrot.slane %v399_v51, 4  ;;  %v629_v59 = vrot.slane %v399_v51, 6  ;;  %v181_v61 = vand.u32 255, %v70_v53 }
  0x24   :  { %v796_v60 = vsel %vm772_vm0, %v398_v44, %v627_v52  ;;  %v290_v62 = vcvt.s32.f32 %v179_v54  ;;  %v400_v63 = vmul.f32 0.003921569, %v289_v55  ;;  %v291_v0 = vcvt.s32.f32 %v180_v56 }
  0x25   :  { %v72_v1 = vunpack.c.1.s8 %v28_v45  ;;  %v797_v2 = vsel %vm774_vm1, %v628_v58, %v629_v59  ;;  %v292_v3 = vcvt.s32.f32 %v181_v61  ;;  %v182_v4 = vand.u32 255, %v71_v57 }
  0x26   :  { %v73_v5 = vunpack.c.2.s8 %v28_v45  ;;  %v798_v6 = vsel %vm776_vm2, %v796_v60, %v797_v2  ;;  %v401_v7 = vmul.f32 0.003921569, %v290_v62  ;;  %v630_v8 = vrot.slane %v400_v63, 2 }
  0x27   :  { %v402_v9 = vmul.f32 0.003921569, %v291_v0  ;;  %1004 = vst [vmem:[#allocation5 + $0x38] sm:$0xff] %v798_v6  ;;  %v403_v10 = vmul.f32 0.003921569, %v292_v3  ;;  %v183_v11 = vand.u32 255, %v72_v1  ;;  %v293_v12 = vcvt.s32.f32 %v182_v4 }
  0x28   :  { %v74_v13 = vunpack.c.3.s8 %v28_v45  ;;  %v631_v14 = vrot.slane %v401_v7, 4  ;;  %v632_v15 = vrot.slane %v401_v7, 6  ;;  %v799_v16 = vsel %vm772_vm0, %v400_v63, %v630_v8 }
  0x29   :  { %v633_v17 = vrot.slane %v402_v9, 2  ;;  %v634_v18 = vrot.slane %v403_v10, 4  ;;  %v635_v19 = vrot.slane %v403_v10, 6  ;;  %v294_v20 = vcvt.s32.f32 %v183_v11 }
  0x2a   :  { %v404_v21 = vmul.f32 0.003921569, %v293_v12  ;;  %v800_v23 = vsel %vm774_vm1, %v631_v14, %v632_v15  ;;  %v184_v25 = vand.u32 255, %v73_v5  ;;  %v185_v26 = vand.u32 255, %v74_v13 }
  0x2b   :  { %v802_v24 = vsel %vm772_vm0, %v402_v9, %v633_v17  ;;  %v801_v27 = vsel %vm776_vm2, %v799_v16, %v800_v23  ;;  %v803_v28 = vsel %vm774_vm1, %v634_v18, %v635_v19  ;;  %v405_v29 = vmul.f32 0.003921569, %v294_v20  ;;  %v31_v16 = vld [vmem:[#allocation2 + $0x40] sm:$0xff] }
  0x2c   :  { %v636_v30 = vrot.slane %v404_v21, 2  ;;  %1005 = vst [vmem:[#allocation5 + $0x40] sm:$0xff] %v801_v27  ;;  %v804_v31 = vsel %vm776_vm2, %v802_v24, %v803_v28  ;;  %v295_v32 = vcvt.s32.f32 %v184_v25  ;;  %v296_v33 = vcvt.s32.f32 %v185_v26 }
  0x2d   :  { %v75_v34 = vunpack.c.0.s8 %v29_v22  ;;  %1006 = vst [vmem:[#allocation5 + $0x48] sm:$0xff] %v804_v31  ;;  %v637_v36 = vrot.slane %v405_v29, 4  ;;  %v638_v37 = vrot.slane %v405_v29, 6  ;;  %v76_v39 = vunpack.c.1.s8 %v29_v22 }
  0x2e   :  { %v805_v38 = vsel %vm772_vm0, %v404_v21, %v636_v30  ;;  %v406_v40 = vmul.f32 0.003921569, %v295_v32  ;;  %v407_v41 = vmul.f32 0.003921569, %v296_v33  ;;  %v77_v43 = vunpack.c.2.s8 %v29_v22  ;;  %v32_v33 = vld [vmem:[#allocation2 + $0x48] sm:$0xff] }
  0x2f   :  { %v186_v42 = vand.u32 255, %v75_v34  ;;  %v806_v44 = vsel %vm774_vm1, %v637_v36, %v638_v37  ;;  %v187_v45 = vand.u32 255, %v76_v39  ;;  %v78_v46 = vunpack.c.3.s8 %v29_v22 }
  0x30   :  { %v79_v47 = vunpack.c.0.s8 %v30_v35  ;;  %v807_v48 = vsel %vm776_vm2, %v805_v38, %v806_v44  ;;  %v639_v49 = vrot.slane %v406_v40, 2  ;;  %v640_v50 = vrot.slane %v407_v41, 4 }
  0x31   :  { %v641_v51 = vrot.slane %v407_v41, 6  ;;  %1007 = vst [vmem:[#allocation5 + $0x50] sm:$0xff] %v807_v48  ;;  %v297_v52 = vcvt.s32.f32 %v186_v42  ;;  %v298_v53 = vcvt.s32.f32 %v187_v45  ;;  %v188_v54 = vand.u32 255, %v77_v43 }
  0x32   :  { %v189_v55 = vand.u32 255, %v78_v46  ;;  %v808_v56 = vsel %vm772_vm0, %v406_v40, %v639_v49  ;;  %v80_v58 = vunpack.c.1.s8 %v30_v35  ;;  %v190_v59 = vand.u32 255, %v79_v47 }
  0x33   :  { %v809_v57 = vsel %vm774_vm1, %v640_v50, %v641_v51  ;;  %v408_v61 = vmul.f32 0.003921569, %v297_v52  ;;  %v409_v62 = vmul.f32 0.003921569, %v298_v53  ;;  %v299_v63 = vcvt.s32.f32 %v188_v54 }
  0x34   :  { %v810_v60 = vsel %vm776_vm2, %v808_v56, %v809_v57  ;;  %v300_v0 = vcvt.s32.f32 %v189_v55  ;;  %v191_v1 = vand.u32 255, %v80_v58  ;;  %v301_v2 = vcvt.s32.f32 %v190_v59 }
  0x35   :  { %1008 = vst [vmem:[#allocation5 + $0x58] sm:$0xff] %v810_v60  ;;  %v81_v3 = vunpack.c.2.s8 %v30_v35  ;;  %v642_v4 = vrot.slane %v408_v61, 2  ;;  %v643_v5 = vrot.slane %v409_v62, 4  ;;  %v644_v6 = vrot.slane %v409_v62, 6 }
  0x36   :  { %v410_v7 = vmul.f32 0.003921569, %v299_v63  ;;  %v411_v8 = vmul.f32 0.003921569, %v300_v0  ;;  %v302_v9 = vcvt.s32.f32 %v191_v1  ;;  %v412_v10 = vmul.f32 0.003921569, %v301_v2 }
  0x37   :  { %v82_v11 = vunpack.c.3.s8 %v30_v35  ;;  %v811_v12 = vsel %vm772_vm0, %v408_v61, %v642_v4  ;;  %v812_v13 = vsel %vm774_vm1, %v643_v5, %v644_v6  ;;  %v192_v15 = vand.u32 255, %v81_v3 }
  0x38   :  { %v645_v14 = vrot.slane %v410_v7, 2  ;;  %v813_v17 = vsel %vm776_vm2, %v811_v12, %v812_v13  ;;  %v646_v18 = vrot.slane %v411_v8, 4  ;;  %v647_v19 = vrot.slane %v411_v8, 6 }
  0x39   :  { %v413_v20 = vmul.f32 0.003921569, %v302_v9  ;;  %1009 = vst [vmem:[#allocation5 + $0x60] sm:$0xff] %v813_v17  ;;  %v648_v22 = vrot.slane %v412_v10, 2  ;;  %v193_v23 = vand.u32 255, %v82_v11  ;;  %v303_v24 = vcvt.s32.f32 %v192_v15 }
  0x3a   :  { %v814_v21 = vsel %vm772_vm0, %v410_v7, %v645_v14  ;;  %v815_v25 = vsel %vm774_vm1, %v646_v18, %v647_v19  ;;  %v83_v28 = vunpack.c.0.s8 %v31_v16  ;;  %v84_v35 = vunpack.c.1.s8 %v31_v16 }
  0x3b   :  { %v649_v26 = vrot.slane %v413_v20, 4  ;;  %v650_v27 = vrot.slane %v413_v20, 6  ;;  %v816_v29 = vsel %vm776_vm2, %v814_v21, %v815_v25  ;;  %v817_v30 = vsel %vm772_vm0, %v412_v10, %v648_v22  ;;  %v33_v10 = vld [vmem:[#allocation2 + $0x50] sm:$0xff] }
  0x3c   :  { %v304_v31 = vcvt.s32.f32 %v193_v23  ;;  %v414_v32 = vmul.f32 0.003921569, %v303_v24  ;;  %1010 = vst [vmem:[#allocation5 + $0x68] sm:$0xff] %v816_v29  ;;  %v194_v36 = vand.u32 255, %v83_v28  ;;  %v85_v37 = vunpack.c.2.s8 %v31_v16  ;;  %v34_v23 = vld [vmem:[#allocation2 + $0x58] sm:$0xff] }
  0x3d   :  { %v818_v34 = vsel %vm774_vm1, %v649_v26, %v650_v27  ;;  %v86_v41 = vunpack.c.3.s8 %v31_v16  ;;  %v195_v42 = vand.u32 255, %v84_v35  ;;  %v87_v45 = vunpack.c.0.s8 %v32_v33 }
  0x3e   :  { %v819_v38 = vsel %vm776_vm2, %v817_v30, %v818_v34  ;;  %v415_v39 = vmul.f32 0.003921569, %v304_v31  ;;  %v651_v40 = vrot.slane %v414_v32, 2  ;;  %v305_v43 = vcvt.s32.f32 %v194_v36 }
  0x3f   :  { %1011 = vst [vmem:[#allocation5 + $0x70] sm:$0xff] %v819_v38  ;;  %v196_v44 = vand.u32 255, %v85_v37  ;;  %v197_v49 = vand.u32 255, %v86_v41  ;;  %v306_v50 = vcvt.s32.f32 %v195_v42  ;;  %v88_v53 = vunpack.c.1.s8 %v32_v33 }
  0x40   :  { %v652_v46 = vrot.slane %v415_v39, 4  ;;  %v653_v47 = vrot.slane %v415_v39, 6  ;;  %v820_v48 = vsel %vm772_vm0, %v414_v32, %v651_v40  ;;  %v416_v51 = vmul.f32 0.003921569, %v305_v43 }
  0x41   :  { %v307_v52 = vcvt.s32.f32 %v196_v44  ;;  %v308_v55 = vcvt.s32.f32 %v197_v49  ;;  %v198_v56 = vand.u32 255, %v87_v45  ;;  %v89_v57 = vunpack.c.2.s8 %v32_v33 }
  0x42   :  { %v821_v54 = vsel %vm774_vm1, %v652_v46, %v653_v47  ;;  %v417_v59 = vmul.f32 0.003921569, %v306_v50  ;;  %v654_v60 = vrot.slane %v416_v51, 2  ;;  %v199_v63 = vand.u32 255, %v88_v53 }
  0x43   :  { %v822_v58 = vsel %vm776_vm2, %v820_v48, %v821_v54  ;;  %v418_v61 = vmul.f32 0.003921569, %v307_v52  ;;  %v419_v62 = vmul.f32 0.003921569, %v308_v55  ;;  %v309_v0 = vcvt.s32.f32 %v198_v56 }
  0x44   :  { %1012 = vst [vmem:[#allocation5 + $0x78] sm:$0xff] %v822_v58  ;;  %v90_v1 = vunpack.c.3.s8 %v32_v33  ;;  %v655_v2 = vrot.slane %v417_v59, 4  ;;  %v656_v3 = vrot.slane %v417_v59, 6  ;;  %v823_v4 = vsel %vm772_vm0, %v416_v51, %v654_v60 }
  0x45   :  { %v657_v5 = vrot.slane %v418_v61, 2  ;;  %v658_v6 = vrot.slane %v419_v62, 4  ;;  %v659_v7 = vrot.slane %v419_v62, 6  ;;  %v310_v8 = vcvt.s32.f32 %v199_v63 }
  0x46   :  { %v420_v9 = vmul.f32 0.003921569, %v309_v0  ;;  %v824_v11 = vsel %vm774_vm1, %v655_v2, %v656_v3  ;;  %v200_v13 = vand.u32 255, %v89_v57  ;;  %v201_v14 = vand.u32 255, %v90_v1 }
  0x47   :  { %v826_v12 = vsel %vm772_vm0, %v418_v61, %v657_v5  ;;  %v825_v15 = vsel %vm776_vm2, %v823_v4, %v824_v11  ;;  %v827_v16 = vsel %vm774_vm1, %v658_v6, %v659_v7  ;;  %v421_v17 = vmul.f32 0.003921569, %v310_v8  ;;  %v35_v4 = vld [vmem:[#allocation2 + $0x60] sm:$0xff] }
  0x48   :  { %v660_v18 = vrot.slane %v420_v9, 2  ;;  %1013 = vst [vmem:[#allocation5 + $0x80] sm:$0xff] %v825_v15  ;;  %v828_v19 = vsel %vm776_vm2, %v826_v12, %v827_v16  ;;  %v311_v20 = vcvt.s32.f32 %v200_v13  ;;  %v312_v21 = vcvt.s32.f32 %v201_v14 }
  0x49   :  { %v91_v22 = vunpack.c.0.s8 %v33_v10  ;;  %1014 = vst [vmem:[#allocation5 + $0x88] sm:$0xff] %v828_v19  ;;  %v661_v24 = vrot.slane %v421_v17, 4  ;;  %v662_v25 = vrot.slane %v421_v17, 6  ;;  %v92_v27 = vunpack.c.1.s8 %v33_v10 }
  0x4a   :  { %v829_v26 = vsel %vm772_vm0, %v420_v9, %v660_v18  ;;  %v422_v28 = vmul.f32 0.003921569, %v311_v20  ;;  %v423_v29 = vmul.f32 0.003921569, %v312_v21  ;;  %v93_v31 = vunpack.c.2.s8 %v33_v10  ;;  %v36_v21 = vld [vmem:[#allocation2 + $0x68] sm:$0xff] }
  0x4b   :  { %v202_v30 = vand.u32 255, %v91_v22  ;;  %v830_v32 = vsel %vm774_vm1, %v661_v24, %v662_v25  ;;  %v203_v33 = vand.u32 255, %v92_v27  ;;  %v94_v34 = vunpack.c.3.s8 %v33_v10 }
  0x4c   :  { %v95_v35 = vunpack.c.0.s8 %v34_v23  ;;  %v831_v36 = vsel %vm776_vm2, %v829_v26, %v830_v32  ;;  %v663_v37 = vrot.slane %v422_v28, 2  ;;  %v664_v38 = vrot.slane %v423_v29, 4 }
  0x4d   :  { %v665_v39 = vrot.slane %v423_v29, 6  ;;  %1015 = vst [vmem:[#allocation5 + $0x90] sm:$0xff] %v831_v36  ;;  %v313_v40 = vcvt.s32.f32 %v202_v30  ;;  %v314_v41 = vcvt.s32.f32 %v203_v33  ;;  %v204_v42 = vand.u32 255, %v93_v31 }
  0x4e   :  { %v205_v43 = vand.u32 255, %v94_v34  ;;  %v832_v44 = vsel %vm772_vm0, %v422_v28, %v663_v37  ;;  %v96_v46 = vunpack.c.1.s8 %v34_v23  ;;  %v206_v47 = vand.u32 255, %v95_v35 }
  0x4f   :  { %v833_v45 = vsel %vm774_vm1, %v664_v38, %v665_v39  ;;  %v424_v49 = vmul.f32 0.003921569, %v313_v40  ;;  %v425_v50 = vmul.f32 0.003921569, %v314_v41  ;;  %v315_v51 = vcvt.s32.f32 %v204_v42 }
  0x50   :  { %v834_v48 = vsel %vm776_vm2, %v832_v44, %v833_v45  ;;  %v316_v52 = vcvt.s32.f32 %v205_v43  ;;  %v207_v53 = vand.u32 255, %v96_v46  ;;  %v317_v54 = vcvt.s32.f32 %v206_v47 }
  0x51   :  { %1016 = vst [vmem:[#allocation5 + $0x98] sm:$0xff] %v834_v48  ;;  %v97_v55 = vunpack.c.2.s8 %v34_v23  ;;  %v666_v56 = vrot.slane %v424_v49, 2  ;;  %v667_v57 = vrot.slane %v425_v50, 4  ;;  %v668_v58 = vrot.slane %v425_v50, 6 }
  0x52   :  { %v426_v59 = vmul.f32 0.003921569, %v315_v51  ;;  %v427_v60 = vmul.f32 0.003921569, %v316_v52  ;;  %v318_v61 = vcvt.s32.f32 %v207_v53  ;;  %v428_v62 = vmul.f32 0.003921569, %v317_v54 }
  0x53   :  { %v98_v63 = vunpack.c.3.s8 %v34_v23  ;;  %v835_v0 = vsel %vm772_vm0, %v424_v49, %v666_v56  ;;  %v836_v1 = vsel %vm774_vm1, %v667_v57, %v668_v58  ;;  %v208_v3 = vand.u32 255, %v97_v55 }
  0x54   :  { %v669_v2 = vrot.slane %v426_v59, 2  ;;  %v837_v5 = vsel %vm776_vm2, %v835_v0, %v836_v1  ;;  %v670_v6 = vrot.slane %v427_v60, 4  ;;  %v671_v7 = vrot.slane %v427_v60, 6 }
  0x55   :  { %v429_v8 = vmul.f32 0.003921569, %v318_v61  ;;  %1017 = vst [vmem:[#allocation5 + $0xa0] sm:$0xff] %v837_v5  ;;  %v672_v10 = vrot.slane %v428_v62, 2  ;;  %v209_v11 = vand.u32 255, %v98_v63  ;;  %v319_v12 = vcvt.s32.f32 %v208_v3 }
  0x56   :  { %v838_v9 = vsel %vm772_vm0, %v426_v59, %v669_v2  ;;  %v839_v13 = vsel %vm774_vm1, %v670_v6, %v671_v7  ;;  %v99_v16 = vunpack.c.0.s8 %v35_v4  ;;  %v100_v23 = vunpack.c.1.s8 %v35_v4 }
  0x57   :  { %v673_v14 = vrot.slane %v429_v8, 4  ;;  %v674_v15 = vrot.slane %v429_v8, 6  ;;  %v840_v17 = vsel %vm776_vm2, %v838_v9, %v839_v13  ;;  %v841_v18 = vsel %vm772_vm0, %v428_v62, %v672_v10  ;;  %v37_v62 = vld [vmem:[#allocation2 + $0x70] sm:$0xff] }
  0x58   :  { %v320_v19 = vcvt.s32.f32 %v209_v11  ;;  %v430_v20 = vmul.f32 0.003921569, %v319_v12  ;;  %1018 = vst [vmem:[#allocation5 + $0xa8] sm:$0xff] %v840_v17  ;;  %v210_v24 = vand.u32 255, %v99_v16  ;;  %v101_v25 = vunpack.c.2.s8 %v35_v4  ;;  %v38_v11 = vld [vmem:[#allocation2 + $0x78] sm:$0xff] }
  0x59   :  { %v842_v22 = vsel %vm774_vm1, %v673_v14, %v674_v15  ;;  %v102_v29 = vunpack.c.3.s8 %v35_v4  ;;  %v211_v30 = vand.u32 255, %v100_v23  ;;  %v103_v33 = vunpack.c.0.s8 %v36_v21 }
  0x5a   :  { %v843_v26 = vsel %vm776_vm2, %v841_v18, %v842_v22  ;;  %v431_v27 = vmul.f32 0.003921569, %v320_v19  ;;  %v675_v28 = vrot.slane %v430_v20, 2  ;;  %v321_v31 = vcvt.s32.f32 %v210_v24 }
  0x5b   :  { %1019 = vst [vmem:[#allocation5 + $0xb0] sm:$0xff] %v843_v26  ;;  %v212_v32 = vand.u32 255, %v101_v25  ;;  %v213_v37 = vand.u32 255, %v102_v29  ;;  %v322_v38 = vcvt.s32.f32 %v211_v30  ;;  %v104_v41 = vunpack.c.1.s8 %v36_v21 }
  0x5c   :  { %v676_v34 = vrot.slane %v431_v27, 4  ;;  %v677_v35 = vrot.slane %v431_v27, 6  ;;  %v844_v36 = vsel %vm772_vm0, %v430_v20, %v675_v28  ;;  %v432_v39 = vmul.f32 0.003921569, %v321_v31 }
  0x5d   :  { %v323_v40 = vcvt.s32.f32 %v212_v32  ;;  %v324_v43 = vcvt.s32.f32 %v213_v37  ;;  %v214_v44 = vand.u32 255, %v103_v33  ;;  %v105_v45 = vunpack.c.2.s8 %v36_v21 }
  0x5e   :  { %v845_v42 = vsel %vm774_vm1, %v676_v34, %v677_v35  ;;  %v433_v47 = vmul.f32 0.003921569, %v322_v38  ;;  %v678_v48 = vrot.slane %v432_v39, 2  ;;  %v215_v51 = vand.u32 255, %v104_v41 }
  0x5f   :  { %v846_v46 = vsel %vm776_vm2, %v844_v36, %v845_v42  ;;  %v434_v49 = vmul.f32 0.003921569, %v323_v40  ;;  %v435_v50 = vmul.f32 0.003921569, %v324_v43  ;;  %v325_v52 = vcvt.s32.f32 %v214_v44 }
  0x60   :  { %1020 = vst [vmem:[#allocation5 + $0xb8] sm:$0xff] %v846_v46  ;;  %v106_v53 = vunpack.c.3.s8 %v36_v21  ;;  %v679_v54 = vrot.slane %v433_v47, 4  ;;  %v680_v55 = vrot.slane %v433_v47, 6  ;;  %v847_v56 = vsel %vm772_vm0, %v432_v39, %v678_v48 }
  0x61   :  { %v681_v57 = vrot.slane %v434_v49, 2  ;;  %v682_v58 = vrot.slane %v435_v50, 4  ;;  %v683_v59 = vrot.slane %v435_v50, 6  ;;  %v326_v60 = vcvt.s32.f32 %v215_v51 }
  0x62   :  { %v436_v61 = vmul.f32 0.003921569, %v325_v52  ;;  %v848_v63 = vsel %vm774_vm1, %v679_v54, %v680_v55  ;;  %v216_v1 = vand.u32 255, %v105_v45  ;;  %v217_v2 = vand.u32 255, %v106_v53 }
  0x63   :  { %v850_v0 = vsel %vm772_vm0, %v434_v49, %v681_v57  ;;  %v849_v3 = vsel %vm776_vm2, %v847_v56, %v848_v63  ;;  %v851_v4 = vsel %vm774_vm1, %v682_v58, %v683_v59  ;;  %v437_v5 = vmul.f32 0.003921569, %v326_v60  ;;  %v39_v56 = vld [vmem:[#allocation2 + $0x80] sm:$0xff] }
  0x64   :  { %v684_v6 = vrot.slane %v436_v61, 2  ;;  %1021 = vst [vmem:[#allocation5 + $0xc0] sm:$0xff] %v849_v3  ;;  %v852_v7 = vsel %vm776_vm2, %v850_v0, %v851_v4  ;;  %v327_v8 = vcvt.s32.f32 %v216_v1  ;;  %v328_v9 = vcvt.s32.f32 %v217_v2 }
  0x65   :  { %v107_v10 = vunpack.c.0.s8 %v37_v62  ;;  %1022 = vst [vmem:[#allocation5 + $0xc8] sm:$0xff] %v852_v7  ;;  %v685_v12 = vrot.slane %v437_v5, 4  ;;  %v686_v13 = vrot.slane %v437_v5, 6  ;;  %v108_v15 = vunpack.c.1.s8 %v37_v62 }
  0x66   :  { %v853_v14 = vsel %vm772_vm0, %v436_v61, %v684_v6  ;;  %v438_v16 = vmul.f32 0.003921569, %v327_v8  ;;  %v439_v17 = vmul.f32 0.003921569, %v328_v9  ;;  %v109_v19 = vunpack.c.2.s8 %v37_v62  ;;  %v40_v9 = vld [vmem:[#allocation2 + $0x88] sm:$0xff] }
  0x67   :  { %v218_v18 = vand.u32 255, %v107_v10  ;;  %v854_v20 = vsel %vm774_vm1, %v685_v12, %v686_v13  ;;  %v219_v21 = vand.u32 255, %v108_v15  ;;  %v110_v22 = vunpack.c.3.s8 %v37_v62 }
  0x68   :  { %v111_v23 = vunpack.c.0.s8 %v38_v11  ;;  %v855_v24 = vsel %vm776_vm2, %v853_v14, %v854_v20  ;;  %v687_v25 = vrot.slane %v438_v16, 2  ;;  %v688_v26 = vrot.slane %v439_v17, 4 }
  0x69   :  { %v689_v27 = vrot.slane %v439_v17, 6  ;;  %1023 = vst [vmem:[#allocation5 + $0xd0] sm:$0xff] %v855_v24  ;;  %v329_v28 = vcvt.s32.f32 %v218_v18  ;;  %v330_v29 = vcvt.s32.f32 %v219_v21  ;;  %v220_v30 = vand.u32 255, %v109_v19 }
  0x6a   :  { %v221_v31 = vand.u32 255, %v110_v22  ;;  %v856_v32 = vsel %vm772_vm0, %v438_v16, %v687_v25  ;;  %v112_v34 = vunpack.c.1.s8 %v38_v11  ;;  %v222_v35 = vand.u32 255, %v111_v23 }
  0x6b   :  { %v857_v33 = vsel %vm774_vm1, %v688_v26, %v689_v27  ;;  %v440_v37 = vmul.f32 0.003921569, %v329_v28  ;;  %v441_v38 = vmul.f32 0.003921569, %v330_v29  ;;  %v331_v39 = vcvt.s32.f32 %v220_v30 }
  0x6c   :  { %v858_v36 = vsel %vm776_vm2, %v856_v32, %v857_v33  ;;  %v332_v40 = vcvt.s32.f32 %v221_v31  ;;  %v223_v41 = vand.u32 255, %v112_v34  ;;  %v333_v42 = vcvt.s32.f32 %v222_v35 }
  0x6d   :  { %1024 = vst [vmem:[#allocation5 + $0xd8] sm:$0xff] %v858_v36  ;;  %v113_v43 = vunpack.c.2.s8 %v38_v11  ;;  %v690_v44 = vrot.slane %v440_v37, 2  ;;  %v691_v45 = vrot.slane %v441_v38, 4  ;;  %v692_v46 = vrot.slane %v441_v38, 6 }
  0x6e   :  { %v442_v47 = vmul.f32 0.003921569, %v331_v39  ;;  %v443_v48 = vmul.f32 0.003921569, %v332_v40  ;;  %v334_v49 = vcvt.s32.f32 %v223_v41  ;;  %v444_v50 = vmul.f32 0.003921569, %v333_v42 }
  0x6f   :  { %v114_v51 = vunpack.c.3.s8 %v38_v11  ;;  %v859_v52 = vsel %vm772_vm0, %v440_v37, %v690_v44  ;;  %v860_v53 = vsel %vm774_vm1, %v691_v45, %v692_v46  ;;  %v224_v55 = vand.u32 255, %v113_v43 }
  0x70   :  { %v693_v54 = vrot.slane %v442_v47, 2  ;;  %v861_v57 = vsel %vm776_vm2, %v859_v52, %v860_v53  ;;  %v694_v58 = vrot.slane %v443_v48, 4  ;;  %v695_v59 = vrot.slane %v443_v48, 6 }
  0x71   :  { %v445_v60 = vmul.f32 0.003921569, %v334_v49  ;;  %1025 = vst [vmem:[#allocation5 + $0xe0] sm:$0xff] %v861_v57  ;;  %v696_v62 = vrot.slane %v444_v50, 2  ;;  %v225_v63 = vand.u32 255, %v114_v51  ;;  %v335_v0 = vcvt.s32.f32 %v224_v55 }
  0x72   :  { %v862_v61 = vsel %vm772_vm0, %v442_v47, %v693_v54  ;;  %v863_v1 = vsel %vm774_vm1, %v694_v58, %v695_v59  ;;  %v115_v4 = vunpack.c.0.s8 %v39_v56  ;;  %v116_v11 = vunpack.c.1.s8 %v39_v56 }
  0x73   :  { %v697_v2 = vrot.slane %v445_v60, 4  ;;  %v698_v3 = vrot.slane %v445_v60, 6  ;;  %v864_v5 = vsel %vm776_vm2, %v862_v61, %v863_v1  ;;  %v865_v6 = vsel %vm772_vm0, %v444_v50, %v696_v62  ;;  %v41_v50 = vld [vmem:[#allocation2 + $0x90] sm:$0xff] }
  0x74   :  { %v336_v7 = vcvt.s32.f32 %v225_v63  ;;  %v446_v8 = vmul.f32 0.003921569, %v335_v0  ;;  %1026 = vst [vmem:[#allocation5 + $0xe8] sm:$0xff] %v864_v5  ;;  %v226_v12 = vand.u32 255, %v115_v4  ;;  %v117_v13 = vunpack.c.2.s8 %v39_v56  ;;  %v42_v63 = vld [vmem:[#allocation2 + $0x98] sm:$0xff] }
  0x75   :  { %v866_v10 = vsel %vm774_vm1, %v697_v2, %v698_v3  ;;  %v118_v17 = vunpack.c.3.s8 %v39_v56  ;;  %v227_v18 = vand.u32 255, %v116_v11  ;;  %v119_v21 = vunpack.c.0.s8 %v40_v9 }
  0x76   :  { %v867_v14 = vsel %vm776_vm2, %v865_v6, %v866_v10  ;;  %v447_v15 = vmul.f32 0.003921569, %v336_v7  ;;  %v699_v16 = vrot.slane %v446_v8, 2  ;;  %v337_v19 = vcvt.s32.f32 %v226_v12 }
  0x77   :  { %1027 = vst [vmem:[#allocation5 + $0xf0] sm:$0xff] %v867_v14  ;;  %v228_v20 = vand.u32 255, %v117_v13  ;;  %v229_v25 = vand.u32 255, %v118_v17  ;;  %v338_v26 = vcvt.s32.f32 %v227_v18  ;;  %v120_v29 = vunpack.c.1.s8 %v40_v9 }
  0x78   :  { %v700_v22 = vrot.slane %v447_v15, 4  ;;  %v701_v23 = vrot.slane %v447_v15, 6  ;;  %v868_v24 = vsel %vm772_vm0, %v446_v8, %v699_v16  ;;  %v448_v27 = vmul.f32 0.003921569, %v337_v19 }
  0x79   :  { %v339_v28 = vcvt.s32.f32 %v228_v20  ;;  %v340_v31 = vcvt.s32.f32 %v229_v25  ;;  %v230_v32 = vand.u32 255, %v119_v21  ;;  %v121_v33 = vunpack.c.2.s8 %v40_v9 }
  0x7a   :  { %v869_v30 = vsel %vm774_vm1, %v700_v22, %v701_v23  ;;  %v449_v35 = vmul.f32 0.003921569, %v338_v26  ;;  %v702_v36 = vrot.slane %v448_v27, 2  ;;  %v231_v39 = vand.u32 255, %v120_v29 }
  0x7b   :  { %v870_v34 = vsel %vm776_vm2, %v868_v24, %v869_v30  ;;  %v450_v37 = vmul.f32 0.003921569, %v339_v28  ;;  %v451_v38 = vmul.f32 0.003921569, %v340_v31  ;;  %v341_v40 = vcvt.s32.f32 %v230_v32 }
  0x7c   :  { %1028 = vst [vmem:[#allocation5 + $0xf8] sm:$0xff] %v870_v34  ;;  %v122_v41 = vunpack.c.3.s8 %v40_v9  ;;  %v703_v42 = vrot.slane %v449_v35, 4  ;;  %v704_v43 = vrot.slane %v449_v35, 6  ;;  %v871_v44 = vsel %vm772_vm0, %v448_v27, %v702_v36 }
  0x7d   :  { %v705_v45 = vrot.slane %v450_v37, 2  ;;  %v706_v46 = vrot.slane %v451_v38, 4  ;;  %v707_v47 = vrot.slane %v451_v38, 6  ;;  %v342_v48 = vcvt.s32.f32 %v231_v39 }
  0x7e   :  { %v452_v49 = vmul.f32 0.003921569, %v341_v40  ;;  %v872_v51 = vsel %vm774_vm1, %v703_v42, %v704_v43  ;;  %v232_v53 = vand.u32 255, %v121_v33  ;;  %v233_v54 = vand.u32 255, %v122_v41 }
  0x7f   :  { %v874_v52 = vsel %vm772_vm0, %v450_v37, %v705_v45  ;;  %v873_v55 = vsel %vm776_vm2, %v871_v44, %v872_v51  ;;  %v875_v56 = vsel %vm774_vm1, %v706_v46, %v707_v47  ;;  %v453_v57 = vmul.f32 0.003921569, %v342_v48  ;;  %v43_v44 = vld [vmem:[#allocation2 + $0xa0] sm:$0xff] }
  0x80   :  { %v708_v58 = vrot.slane %v452_v49, 2  ;;  %1029 = vst [vmem:[#allocation5 + $0x100] sm:$0xff] %v873_v55  ;;  %v876_v59 = vsel %vm776_vm2, %v874_v52, %v875_v56  ;;  %v343_v60 = vcvt.s32.f32 %v232_v53  ;;  %v344_v61 = vcvt.s32.f32 %v233_v54 }
  0x81   :  { %v123_v62 = vunpack.c.0.s8 %v41_v50  ;;  %1030 = vst [vmem:[#allocation5 + $0x108] sm:$0xff] %v876_v59  ;;  %v709_v0 = vrot.slane %v453_v57, 4  ;;  %v710_v1 = vrot.slane %v453_v57, 6  ;;  %v124_v3 = vunpack.c.1.s8 %v41_v50 }
  0x82   :  { %v877_v2 = vsel %vm772_vm0, %v452_v49, %v708_v58  ;;  %v454_v4 = vmul.f32 0.003921569, %v343_v60  ;;  %v455_v5 = vmul.f32 0.003921569, %v344_v61  ;;  %v125_v7 = vunpack.c.2.s8 %v41_v50  ;;  %v44_v61 = vld [vmem:[#allocation2 + $0xa8] sm:$0xff] }
  0x83   :  { %v234_v6 = vand.u32 255, %v123_v62  ;;  %v878_v8 = vsel %vm774_vm1, %v709_v0, %v710_v1  ;;  %v235_v9 = vand.u32 255, %v124_v3  ;;  %v126_v10 = vunpack.c.3.s8 %v41_v50 }
  0x84   :  { %v127_v11 = vunpack.c.0.s8 %v42_v63  ;;  %v879_v12 = vsel %vm776_vm2, %v877_v2, %v878_v8  ;;  %v711_v13 = vrot.slane %v454_v4, 2  ;;  %v712_v14 = vrot.slane %v455_v5, 4 }
  0x85   :  { %v713_v15 = vrot.slane %v455_v5, 6  ;;  %1031 = vst [vmem:[#allocation5 + $0x110] sm:$0xff] %v879_v12  ;;  %v345_v16 = vcvt.s32.f32 %v234_v6  ;;  %v346_v17 = vcvt.s32.f32 %v235_v9  ;;  %v236_v18 = vand.u32 255, %v125_v7 }
  0x86   :  { %v237_v19 = vand.u32 255, %v126_v10  ;;  %v880_v20 = vsel %vm772_vm0, %v454_v4, %v711_v13  ;;  %v128_v22 = vunpack.c.1.s8 %v42_v63  ;;  %v238_v23 = vand.u32 255, %v127_v11 }
  0x87   :  { %v881_v21 = vsel %vm774_vm1, %v712_v14, %v713_v15  ;;  %v456_v25 = vmul.f32 0.003921569, %v345_v16  ;;  %v457_v26 = vmul.f32 0.003921569, %v346_v17  ;;  %v347_v27 = vcvt.s32.f32 %v236_v18 }
  0x88   :  { %v882_v24 = vsel %vm776_vm2, %v880_v20, %v881_v21  ;;  %v348_v28 = vcvt.s32.f32 %v237_v19  ;;  %v239_v29 = vand.u32 255, %v128_v22  ;;  %v349_v30 = vcvt.s32.f32 %v238_v23 }
  0x89   :  { %1032 = vst [vmem:[#allocation5 + $0x118] sm:$0xff] %v882_v24  ;;  %v129_v31 = vunpack.c.2.s8 %v42_v63  ;;  %v714_v32 = vrot.slane %v456_v25, 2  ;;  %v715_v33 = vrot.slane %v457_v26, 4  ;;  %v716_v34 = vrot.slane %v457_v26, 6 }
  0x8a   :  { %v458_v35 = vmul.f32 0.003921569, %v347_v27  ;;  %v459_v36 = vmul.f32 0.003921569, %v348_v28  ;;  %v350_v37 = vcvt.s32.f32 %v239_v29  ;;  %v460_v38 = vmul.f32 0.003921569, %v349_v30 }
  0x8b   :  { %v130_v39 = vunpack.c.3.s8 %v42_v63  ;;  %v883_v40 = vsel %vm772_vm0, %v456_v25, %v714_v32  ;;  %v884_v41 = vsel %vm774_vm1, %v715_v33, %v716_v34  ;;  %v240_v43 = vand.u32 255, %v129_v31 }
  0x8c   :  { %v717_v42 = vrot.slane %v458_v35, 2  ;;  %v885_v45 = vsel %vm776_vm2, %v883_v40, %v884_v41  ;;  %v718_v46 = vrot.slane %v459_v36, 4  ;;  %v719_v47 = vrot.slane %v459_v36, 6 }
  0x8d   :  { %v461_v48 = vmul.f32 0.003921569, %v350_v37  ;;  %1033 = vst [vmem:[#allocation5 + $0x120] sm:$0xff] %v885_v45  ;;  %v720_v50 = vrot.slane %v460_v38, 2  ;;  %v241_v51 = vand.u32 255, %v130_v39  ;;  %v351_v52 = vcvt.s32.f32 %v240_v43 }
  0x8e   :  { %v886_v49 = vsel %vm772_vm0, %v458_v35, %v717_v42  ;;  %v887_v53 = vsel %vm774_vm1, %v718_v46, %v719_v47  ;;  %v131_v56 = vunpack.c.0.s8 %v43_v44  ;;  %v132_v63 = vunpack.c.1.s8 %v43_v44 }
  0x8f   :  { %v721_v54 = vrot.slane %v461_v48, 4  ;;  %v722_v55 = vrot.slane %v461_v48, 6  ;;  %v888_v57 = vsel %vm776_vm2, %v886_v49, %v887_v53  ;;  %v889_v58 = vsel %vm772_vm0, %v460_v38, %v720_v50  ;;  %v45_v38 = vld [vmem:[#allocation2 + $0xb0] sm:$0xff] }
  0x90   :  { %v352_v59 = vcvt.s32.f32 %v241_v51  ;;  %v462_v60 = vmul.f32 0.003921569, %v351_v52  ;;  %1034 = vst [vmem:[#allocation5 + $0x128] sm:$0xff] %v888_v57  ;;  %v242_v0 = vand.u32 255, %v131_v56  ;;  %v133_v1 = vunpack.c.2.s8 %v43_v44  ;;  %v46_v51 = vld [vmem:[#allocation2 + $0xb8] sm:$0xff] }
  0x91   :  { %v890_v62 = vsel %vm774_vm1, %v721_v54, %v722_v55  ;;  %v134_v5 = vunpack.c.3.s8 %v43_v44  ;;  %v243_v6 = vand.u32 255, %v132_v63  ;;  %v135_v9 = vunpack.c.0.s8 %v44_v61 }
  0x92   :  { %v891_v2 = vsel %vm776_vm2, %v889_v58, %v890_v62  ;;  %v463_v3 = vmul.f32 0.003921569, %v352_v59  ;;  %v723_v4 = vrot.slane %v462_v60, 2  ;;  %v353_v7 = vcvt.s32.f32 %v242_v0 }
  0x93   :  { %1035 = vst [vmem:[#allocation5 + $0x130] sm:$0xff] %v891_v2  ;;  %v244_v8 = vand.u32 255, %v133_v1  ;;  %v245_v13 = vand.u32 255, %v134_v5  ;;  %v354_v14 = vcvt.s32.f32 %v243_v6  ;;  %v136_v17 = vunpack.c.1.s8 %v44_v61 }
  0x94   :  { %v724_v10 = vrot.slane %v463_v3, 4  ;;  %v725_v11 = vrot.slane %v463_v3, 6  ;;  %v892_v12 = vsel %vm772_vm0, %v462_v60, %v723_v4  ;;  %v464_v15 = vmul.f32 0.003921569, %v353_v7 }
  0x95   :  { %v355_v16 = vcvt.s32.f32 %v244_v8  ;;  %v356_v19 = vcvt.s32.f32 %v245_v13  ;;  %v246_v20 = vand.u32 255, %v135_v9  ;;  %v137_v21 = vunpack.c.2.s8 %v44_v61 }
  0x96   :  { %v893_v18 = vsel %vm774_vm1, %v724_v10, %v725_v11  ;;  %v465_v23 = vmul.f32 0.003921569, %v354_v14  ;;  %v726_v24 = vrot.slane %v464_v15, 2  ;;  %v247_v27 = vand.u32 255, %v136_v17 }
  0x97   :  { %v894_v22 = vsel %vm776_vm2, %v892_v12, %v893_v18  ;;  %v466_v25 = vmul.f32 0.003921569, %v355_v16  ;;  %v467_v26 = vmul.f32 0.003921569, %v356_v19  ;;  %v357_v28 = vcvt.s32.f32 %v246_v20 }
  0x98   :  { %1036 = vst [vmem:[#allocation5 + $0x138] sm:$0xff] %v894_v22  ;;  %v138_v29 = vunpack.c.3.s8 %v44_v61  ;;  %v727_v30 = vrot.slane %v465_v23, 4  ;;  %v728_v31 = vrot.slane %v465_v23, 6  ;;  %v895_v32 = vsel %vm772_vm0, %v464_v15, %v726_v24 }
  0x99   :  { %v729_v33 = vrot.slane %v466_v25, 2  ;;  %v730_v34 = vrot.slane %v467_v26, 4  ;;  %v731_v35 = vrot.slane %v467_v26, 6  ;;  %v358_v36 = vcvt.s32.f32 %v247_v27 }
  0x9a   :  { %v468_v37 = vmul.f32 0.003921569, %v357_v28  ;;  %v896_v39 = vsel %vm774_vm1, %v727_v30, %v728_v31  ;;  %v248_v41 = vand.u32 255, %v137_v21  ;;  %v249_v42 = vand.u32 255, %v138_v29 }
  0x9b   :  { %v898_v40 = vsel %vm772_vm0, %v466_v25, %v729_v33  ;;  %v897_v43 = vsel %vm776_vm2, %v895_v32, %v896_v39  ;;  %v899_v44 = vsel %vm774_vm1, %v730_v34, %v731_v35  ;;  %v469_v45 = vmul.f32 0.003921569, %v358_v36  ;;  %v47_v32 = vld [vmem:[#allocation2 + $0xc0] sm:$0xff] }
  0x9c   :  { %v732_v46 = vrot.slane %v468_v37, 2  ;;  %1037 = vst [vmem:[#allocation5 + $0x140] sm:$0xff] %v897_v43  ;;  %v900_v47 = vsel %vm776_vm2, %v898_v40, %v899_v44  ;;  %v359_v48 = vcvt.s32.f32 %v248_v41  ;;  %v360_v49 = vcvt.s32.f32 %v249_v42 }
  0x9d   :  { %v139_v50 = vunpack.c.0.s8 %v45_v38  ;;  %1038 = vst [vmem:[#allocation5 + $0x148] sm:$0xff] %v900_v47  ;;  %v733_v52 = vrot.slane %v469_v45, 4  ;;  %v734_v53 = vrot.slane %v469_v45, 6  ;;  %v140_v55 = vunpack.c.1.s8 %v45_v38 }
  0x9e   :  { %v901_v54 = vsel %vm772_vm0, %v468_v37, %v732_v46  ;;  %v470_v56 = vmul.f32 0.003921569, %v359_v48  ;;  %v471_v57 = vmul.f32 0.003921569, %v360_v49  ;;  %v141_v59 = vunpack.c.2.s8 %v45_v38  ;;  %v48_v49 = vld [vmem:[#allocation2 + $0xc8] sm:$0xff] }
  0x9f   :  { %v250_v58 = vand.u32 255, %v139_v50  ;;  %v902_v60 = vsel %vm774_vm1, %v733_v52, %v734_v53  ;;  %v251_v61 = vand.u32 255, %v140_v55  ;;  %v142_v62 = vunpack.c.3.s8 %v45_v38 }
  0xa0   :  { %v143_v63 = vunpack.c.0.s8 %v46_v51  ;;  %v903_v0 = vsel %vm776_vm2, %v901_v54, %v902_v60  ;;  %v735_v1 = vrot.slane %v470_v56, 2  ;;  %v736_v2 = vrot.slane %v471_v57, 4 }
  0xa1   :  { %v737_v3 = vrot.slane %v471_v57, 6  ;;  %1039 = vst [vmem:[#allocation5 + $0x150] sm:$0xff] %v903_v0  ;;  %v361_v4 = vcvt.s32.f32 %v250_v58  ;;  %v362_v5 = vcvt.s32.f32 %v251_v61  ;;  %v252_v6 = vand.u32 255, %v141_v59 }
  0xa2   :  { %v253_v7 = vand.u32 255, %v142_v62  ;;  %v904_v8 = vsel %vm772_vm0, %v470_v56, %v735_v1  ;;  %v144_v10 = vunpack.c.1.s8 %v46_v51  ;;  %v254_v11 = vand.u32 255, %v143_v63 }
  0xa3   :  { %v905_v9 = vsel %vm774_vm1, %v736_v2, %v737_v3  ;;  %v472_v13 = vmul.f32 0.003921569, %v361_v4  ;;  %v473_v14 = vmul.f32 0.003921569, %v362_v5  ;;  %v363_v15 = vcvt.s32.f32 %v252_v6 }
  0xa4   :  { %v906_v12 = vsel %vm776_vm2, %v904_v8, %v905_v9  ;;  %v364_v16 = vcvt.s32.f32 %v253_v7  ;;  %v255_v17 = vand.u32 255, %v144_v10  ;;  %v365_v18 = vcvt.s32.f32 %v254_v11 }
  0xa5   :  { %1040 = vst [vmem:[#allocation5 + $0x158] sm:$0xff] %v906_v12  ;;  %v145_v19 = vunpack.c.2.s8 %v46_v51  ;;  %v738_v20 = vrot.slane %v472_v13, 2  ;;  %v739_v21 = vrot.slane %v473_v14, 4  ;;  %v740_v22 = vrot.slane %v473_v14, 6 }
  0xa6   :  { %v474_v23 = vmul.f32 0.003921569, %v363_v15  ;;  %v475_v24 = vmul.f32 0.003921569, %v364_v16  ;;  %v366_v25 = vcvt.s32.f32 %v255_v17  ;;  %v476_v26 = vmul.f32 0.003921569, %v365_v18 }
  0xa7   :  { %v146_v27 = vunpack.c.3.s8 %v46_v51  ;;  %v907_v28 = vsel %vm772_vm0, %v472_v13, %v738_v20  ;;  %v908_v29 = vsel %vm774_vm1, %v739_v21, %v740_v22  ;;  %v256_v31 = vand.u32 255, %v145_v19 }
  0xa8   :  { %v741_v30 = vrot.slane %v474_v23, 2  ;;  %v909_v33 = vsel %vm776_vm2, %v907_v28, %v908_v29  ;;  %v742_v34 = vrot.slane %v475_v24, 4  ;;  %v743_v35 = vrot.slane %v475_v24, 6 }
  0xa9   :  { %v477_v36 = vmul.f32 0.003921569, %v366_v25  ;;  %1041 = vst [vmem:[#allocation5 + $0x160] sm:$0xff] %v909_v33  ;;  %v744_v38 = vrot.slane %v476_v26, 2  ;;  %v257_v39 = vand.u32 255, %v146_v27  ;;  %v367_v40 = vcvt.s32.f32 %v256_v31 }
  0xaa   :  { %v910_v37 = vsel %vm772_vm0, %v474_v23, %v741_v30  ;;  %v911_v41 = vsel %vm774_vm1, %v742_v34, %v743_v35  ;;  %v147_v44 = vunpack.c.0.s8 %v47_v32  ;;  %v148_v51 = vunpack.c.1.s8 %v47_v32 }
  0xab   :  { %v745_v42 = vrot.slane %v477_v36, 4  ;;  %v746_v43 = vrot.slane %v477_v36, 6  ;;  %v912_v45 = vsel %vm776_vm2, %v910_v37, %v911_v41  ;;  %v913_v46 = vsel %vm772_vm0, %v476_v26, %v744_v38  ;;  %v49_v26 = vld [vmem:[#allocation2 + $0xd0] sm:$0xff] }
  0xac   :  { %v368_v47 = vcvt.s32.f32 %v257_v39  ;;  %v478_v48 = vmul.f32 0.003921569, %v367_v40  ;;  %1042 = vst [vmem:[#allocation5 + $0x168] sm:$0xff] %v912_v45  ;;  %v258_v52 = vand.u32 255, %v147_v44  ;;  %v149_v53 = vunpack.c.2.s8 %v47_v32  ;;  %v50_v39 = vld [vmem:[#allocation2 + $0xd8] sm:$0x1f] }
  0xad   :  { %v914_v50 = vsel %vm774_vm1, %v745_v42, %v746_v43  ;;  %v150_v57 = vunpack.c.3.s8 %v47_v32  ;;  %v259_v58 = vand.u32 255, %v148_v51  ;;  %v151_v61 = vunpack.c.0.s8 %v48_v49 }
  0xae   :  { %v915_v54 = vsel %vm776_vm2, %v913_v46, %v914_v50  ;;  %v479_v55 = vmul.f32 0.003921569, %v368_v47  ;;  %v747_v56 = vrot.slane %v478_v48, 2  ;;  %v369_v59 = vcvt.s32.f32 %v258_v52 }
  0xaf   :  { %1043 = vst [vmem:[#allocation5 + $0x170] sm:$0xff] %v915_v54  ;;  %v260_v60 = vand.u32 255, %v149_v53  ;;  %v261_v1 = vand.u32 255, %v150_v57  ;;  %v370_v2 = vcvt.s32.f32 %v259_v58  ;;  %v152_v5 = vunpack.c.1.s8 %v48_v49 }
  0xb0   :  { %v748_v62 = vrot.slane %v479_v55, 4  ;;  %v749_v63 = vrot.slane %v479_v55, 6  ;;  %v916_v0 = vsel %vm772_vm0, %v478_v48, %v747_v56  ;;  %v480_v3 = vmul.f32 0.003921569, %v369_v59 }
  0xb1   :  { %v371_v4 = vcvt.s32.f32 %v260_v60  ;;  %v372_v7 = vcvt.s32.f32 %v261_v1  ;;  %v262_v8 = vand.u32 255, %v151_v61  ;;  %v153_v9 = vunpack.c.2.s8 %v48_v49 }
  0xb2   :  { %v917_v6 = vsel %vm774_vm1, %v748_v62, %v749_v63  ;;  %v481_v11 = vmul.f32 0.003921569, %v370_v2  ;;  %v750_v12 = vrot.slane %v480_v3, 2  ;;  %v263_v15 = vand.u32 255, %v152_v5 }
  0xb3   :  { %v918_v10 = vsel %vm776_vm2, %v916_v0, %v917_v6  ;;  %v482_v13 = vmul.f32 0.003921569, %v371_v4  ;;  %v483_v14 = vmul.f32 0.003921569, %v372_v7  ;;  %v373_v16 = vcvt.s32.f32 %v262_v8 }
  0xb4   :  { %1044 = vst [vmem:[#allocation5 + $0x178] sm:$0xff] %v918_v10  ;;  %v154_v17 = vunpack.c.3.s8 %v48_v49  ;;  %v751_v18 = vrot.slane %v481_v11, 4  ;;  %v752_v19 = vrot.slane %v481_v11, 6  ;;  %v919_v20 = vsel %vm772_vm0, %v480_v3, %v750_v12 }
  0xb5   :  { %v753_v21 = vrot.slane %v482_v13, 2  ;;  %v754_v22 = vrot.slane %v483_v14, 4  ;;  %v755_v23 = vrot.slane %v483_v14, 6  ;;  %v374_v24 = vcvt.s32.f32 %v263_v15 }
  0xb6   :  { %v484_v25 = vmul.f32 0.003921569, %v373_v16  ;;  %v920_v27 = vsel %vm774_vm1, %v751_v18, %v752_v19  ;;  %v264_v29 = vand.u32 255, %v153_v9  ;;  %v265_v30 = vand.u32 255, %v154_v17 }
  0xb7   :  { %v922_v28 = vsel %vm772_vm0, %v482_v13, %v753_v21  ;;  %v921_v31 = vsel %vm776_vm2, %v919_v20, %v920_v27  ;;  %v923_v32 = vsel %vm774_vm1, %v754_v22, %v755_v23  ;;  %v485_v33 = vmul.f32 0.003921569, %v374_v24 }
  0xb8   :  { %v756_v34 = vrot.slane %v484_v25, 2  ;;  %1045 = vst [vmem:[#allocation5 + $0x180] sm:$0xff] %v921_v31  ;;  %v924_v35 = vsel %vm776_vm2, %v922_v28, %v923_v32  ;;  %v375_v36 = vcvt.s32.f32 %v264_v29  ;;  %v376_v37 = vcvt.s32.f32 %v265_v30 }
  0xb9   :  { %v155_v38 = vunpack.c.0.s8 %v49_v26  ;;  %1046 = vst [vmem:[#allocation5 + $0x188] sm:$0xff] %v924_v35  ;;  %v757_v40 = vrot.slane %v485_v33, 4  ;;  %v758_v41 = vrot.slane %v485_v33, 6  ;;  %v156_v43 = vunpack.c.1.s8 %v49_v26 }
  0xba   :  { %v925_v42 = vsel %vm772_vm0, %v484_v25, %v756_v34  ;;  %v486_v44 = vmul.f32 0.003921569, %v375_v36  ;;  %v487_v45 = vmul.f32 0.003921569, %v376_v37  ;;  %v157_v47 = vunpack.c.2.s8 %v49_v26 }
  0xbb   :  { %v266_v46 = vand.u32 255, %v155_v38  ;;  %v926_v48 = vsel %vm774_vm1, %v757_v40, %v758_v41  ;;  %v267_v49 = vand.u32 255, %v156_v43  ;;  %v158_v50 = vunpack.c.3.s8 %v49_v26 }
  0xbc   :  { %v159_v51 = vunpack.c.0.s8 %v50_v39  ;;  %v927_v52 = vsel %vm776_vm2, %v925_v42, %v926_v48  ;;  %v759_v53 = vrot.slane %v486_v44, 2  ;;  %v760_v54 = vrot.slane %v487_v45, 4 }
  0xbd   :  { %v761_v55 = vrot.slane %v487_v45, 6  ;;  %1047 = vst [vmem:[#allocation5 + $0x190] sm:$0xff] %v927_v52  ;;  %v377_v56 = vcvt.s32.f32 %v266_v46  ;;  %v378_v57 = vcvt.s32.f32 %v267_v49  ;;  %v268_v58 = vand.u32 255, %v157_v47 }
  0xbe   :  { %v269_v59 = vand.u32 255, %v158_v50  ;;  %v928_v60 = vsel %vm772_vm0, %v486_v44, %v759_v53  ;;  %v160_v62 = vunpack.c.1.s8 %v50_v39  ;;  %v270_v63 = vand.u32 255, %v159_v51 }
  0xbf   :  { %v929_v61 = vsel %vm774_vm1, %v760_v54, %v761_v55  ;;  %v488_v1 = vmul.f32 0.003921569, %v377_v56  ;;  %v489_v2 = vmul.f32 0.003921569, %v378_v57  ;;  %v379_v3 = vcvt.s32.f32 %v268_v58 }
  0xc0   :  { %v930_v0 = vsel %vm776_vm2, %v928_v60, %v929_v61  ;;  %v380_v4 = vcvt.s32.f32 %v269_v59  ;;  %v271_v5 = vand.u32 255, %v160_v62  ;;  %v381_v6 = vcvt.s32.f32 %v270_v63 }
  0xc1   :  { %1048 = vst [vmem:[#allocation5 + $0x198] sm:$0xff] %v930_v0  ;;  %v161_v7 = vunpack.c.2.s8 %v50_v39  ;;  %v762_v8 = vrot.slane %v488_v1, 2  ;;  %v763_v9 = vrot.slane %v489_v2, 4  ;;  %v764_v10 = vrot.slane %v489_v2, 6 }
  0xc2   :  { %v490_v11 = vmul.f32 0.003921569, %v379_v3  ;;  %v491_v12 = vmul.f32 0.003921569, %v380_v4  ;;  %v382_v13 = vcvt.s32.f32 %v271_v5  ;;  %v492_v14 = vmul.f32 0.003921569, %v381_v6 }
  0xc3   :  { %v272_v15 = vand.u32 255, %v161_v7  ;;  %v931_v16 = vsel %vm772_vm0, %v488_v1, %v762_v8  ;;  %v932_v17 = vsel %vm774_vm1, %v763_v9, %v764_v10  ;;  %vm1052_vm3 = vcmask 517120  }
  0xc4   :  { %v765_v18 = vrot.slane %v490_v11, 2  ;;  %v933_v19 = vsel %vm776_vm2, %v931_v16, %v932_v17  ;;  %v766_v20 = vrot.slane %v491_v12, 4  ;;  %v767_v21 = vrot.slane %v491_v12, 6 }
  0xc5   :  { %v493_v22 = vmul.f32 0.003921569, %v382_v13  ;;  %1049 = vst [vmem:[#allocation5 + $0x1a0] sm:$0xff] %v933_v19  ;;  %v768_v24 = vrot.slane %v492_v14, 2  ;;  %v383_v25 = vcvt.s32.f32 %v272_v15 }
  0xc6   :  { %v934_v23 = vsel %vm772_vm0, %v490_v11, %v765_v18  ;;  %v935_v26 = vsel %vm774_vm1, %v766_v20, %v767_v21 }
  0xc7   :  { %v769_v27 = vrot.slane %v493_v22, 4  ;;  %v770_v28 = vrot.slane %v493_v22, 6  ;;  %v936_v29 = vsel %vm776_vm2, %v934_v23, %v935_v26  ;;  %v937_v30 = vsel %vm772_vm0, %v492_v14, %v768_v24 }
  0xc8   :  { %v494_v31 = vmul.f32 0.003921569, %v383_v25  ;;  %1050 = vst [vmem:[#allocation5 + $0x1a8] sm:$0xff] %v936_v29 }
  0xc9   :  { %v938_v32 = vsel %vm774_vm1, %v769_v27, %v770_v28 }
  0xca   :  { %v939_v33 = vsel %vm776_vm2, %v937_v30, %v938_v32  ;;  %v771_v34 = vrot.slane %v494_v31, 2 }
  0xcb   :  { %1051 = vst [vmem:[#allocation5 + $0x1b0] sm:$0xff] %v939_v33 }
  0xcc   :  { %v940_v35 = vsel %vm772_vm0, %v494_v31, %v771_v34 }
  0xcd   :  { %1053 = vst.msk [vmem:[#allocation5 + $0x1b8] sm:$0x3] %vm1052_vm3, %v940_v35 }
  0xce   :  { %1064 = dma.vmem_to_hbm [thread:$0]  %s1060_s11, 7072, %s1062_s14, [#allocation4]  }
  0xcf   :  { %1123 = dma.done.wait [#allocation4], 7072  }
  0xd0   :  { %1124 = vsyncadd [#allocation4], 4294960224 }
  0xd1   :  { %1069 = vsyncpa [#allocation3], 1 }
  0xd2   :  { %1070 = vsyncpa [#allocation4], 1 }

</bundles_post_ra>
